<compile_context>
chip_gen: v6e
topology: v6e:2x2x1
jax: 0.10.0
libtpu: 0.0.40
codegen_flags: <defaults>
</compile_context>

<pallas_src>
import math
import functools

import jax
import jax.numpy as jnp
from jax.experimental import pallas as pl
from jax.experimental.pallas import tpu as pltpu


def _arc_kernel(x_ref, wt_ref, lab_ref, o_ref, *, s, cos_m, sin_m, th, mm):
    tb, tn = o_ref.shape
    # bf16 x (tb, K) @ bf16 normalize(W)^T (K, tn) -> f32 (tb, tn) on the MXU.
    cos_th = jnp.dot(x_ref[...], wt_ref[...],
                     preferred_element_type=jnp.float32)
    cos_th = jnp.clip(cos_th, -1.0, 1.0)

    sin_th = jnp.sqrt(1.0 - cos_th * cos_th)          # sqrt rides the EUP slot
    cos_th_m = cos_th * cos_m - sin_th * sin_m
    # where(cos_th > th, cos_th_m, cos_th - mm); the PyTorch code applies the
    # identical condition twice, so a single select is equivalent.
    cos_th_m = jnp.where(cos_th > th, cos_th_m, cos_th - mm)

    # one-hot(labels) select: shift the (tb, 1) label by this tile's class
    # offset once (cheap narrow op) and compare against a plain lane iota --
    # no full-tile iota add, no float one-hot blend.
    lab_local = lab_ref[...] - pl.program_id(0) * tn
    col = jax.lax.broadcasted_iota(jnp.int32, (tb, tn), 1)
    out = jnp.where(col == lab_local, cos_th_m, cos_th)
    o_ref[...] = (out * s).astype(o_ref.dtype)


def prepare_arc_weight(weight, dtype=jnp.bfloat16):
    """normalize(weight) rows -> transpose -> cast, in one memory-bound pass.

    weight: (out_features, in_features) float.  Returns (in_features,
    out_features) in `dtype` (bf16 by default, matching the MXU path).
    Cache the result across forward calls while the weight is unchanged.
    """
    w = weight.astype(jnp.float32)
    # rsqrt(max(sumsq, 1e-24)) == 1 / max(||w||, 1e-12)  (F.normalize eps).
    inv = jax.lax.rsqrt(jnp.maximum(jnp.sum(w * w, axis=1, keepdims=True), 1e-24))
    return (w * inv).T.astype(dtype)


def _pick_tile(dim, candidates):
    # Prefer the largest candidate that divides `dim` AND leaves >= 2 grid
    # steps; else largest divisor; else the full dim (legal: block == array).
    for c in candidates:
        if dim % c == 0 and dim // c >= 2:
            return c
    for c in candidates:
        if dim % c == 0:
            return c
    return dim


def _vmem_capacity_bytes():
    try:
        return int(pltpu.get_tpu_info().vmem_capacity_bytes)
    except Exception:
        return 64 << 20   # conservative (v7x per-TC) fallback


def arc_module_forward(inputs, labels, weight=None, *, s=10.0, m=0.5,
                       wnt=None, tb=None, tn=None, out_dtype=jnp.bfloat16):
    """ArcFace forward.

    inputs:  (B, in_features) float (embeddings; typically L2-normalized)
    labels:  (B,) or (B, 1) integer class indices
    weight:  (out_features, in_features) float (nn.Parameter layout), OR pass
             a cached `wnt = prepare_arc_weight(weight)` instead.
    out_dtype: bf16 by default (halves the HBM-store-bound logit writeback);
             pass jnp.float32 if the downstream loss needs full precision.
    returns: (B, out_features) in out_dtype.
    """
    if wnt is None:
        assert weight is not None
        wnt = prepare_arc_weight(weight)
    K, N = wnt.shape
    B, K2 = inputs.shape
    assert K == K2
    assert N < 2 ** 31, "int32 lane iota limits out_features to < 2^31"
    if labels.ndim == 1:
        labels = labels[:, None]
    labels = labels.astype(jnp.int32)
    x = inputs.astype(wnt.dtype)  # bf16 MXU operands; accumulation stays f32

    # Pad batch to a multiple of 16 (bf16 sublane packing = 16 rows / vreg).
    B_pad = -(-B // 16) * 16
    if B_pad != B:
        x = jnp.pad(x, ((0, B_pad - B), (0, 0)))
        labels = jnp.pad(labels, ((0, B_pad - B), (0, 0)), constant_values=-1)

    if tn is None:
        tn = _pick_tile(N, (2048, 1024, 512, 256, 128))
    if tb is None:
        tb = _pick_tile(B_pad, (2048, 1024, 512, 256, 128, 64, 32, 16))
    assert B_pad % tb == 0 and N % tn == 0

    in_sz = jnp.dtype(wnt.dtype).itemsize
    out_sz = jnp.dtype(out_dtype).itemsize

    def footprint(tb_, tn_):
        # Double-buffered x / W^T / out tiles; the (tb,1) i32 label tile pads
        # to 128 lanes in VMEM.
        return 2 * (tb_ * K * in_sz + K * tn_ * in_sz
                    + tb_ * tn_ * out_sz + tb_ * 128 * 4)

    # Generation-aware budget: ~60% of reported VMEM (v5e/v6e: 128 MiB,
    # v7x: 64 MiB per TC), the rest left for Mosaic internal scratch.
    vmem_cap = _vmem_capacity_bytes()
    budget = int(vmem_cap * 0.6)
    while (footprint(tb, tn) > budget and tn % 2 == 0
           and tn // 2 >= 128 and N % (tn // 2) == 0):
        tn //= 2
    while (footprint(tb, tn) > budget and tb % 2 == 0
           and tb // 2 >= 16 and B_pad % (tb // 2) == 0):
        tb //= 2
    vmem_limit = int(max(min(vmem_cap - (4 << 20),
                             footprint(tb, tn) + (8 << 20)),
                         32 << 20))

    cos_m = math.cos(m)
    sin_m = math.sin(m)
    th = math.cos(math.pi - m)
    mm = math.sin(math.pi - m) * m
    kernel = functools.partial(_arc_kernel, s=float(s), cos_m=cos_m,
                               sin_m=sin_m, th=th, mm=mm)

    out = pl.pallas_call(
        kernel,
        out_shape=jax.ShapeDtypeStruct((B_pad, N), out_dtype),
        grid_spec=pltpu.PrefetchScalarGridSpec(
            num_scalar_prefetch=0,
            # Class axis leading (many steps -> balanced megacore sharding),
            # batch axis innermost: the big (K, tn) normalize(W)^T tile stays
            # resident across the inner batch sweep and is read from HBM only
            # once; only the small x / label tiles re-stream.
            grid=(N // tn, B_pad // tb),
            in_specs=[
                pl.BlockSpec((tb, K), lambda j, i: (i, 0)),   # x (bf16)
                pl.BlockSpec((K, tn), lambda j, i: (0, j)),   # normalize(W)^T
                pl.BlockSpec((tb, 1), lambda j, i: (i, 0)),   # labels (int32)
            ],
            out_specs=pl.BlockSpec((tb, tn), lambda j, i: (j, i)[::-1]
                                   if False else (i, j)),
        ),
        compiler_params=pltpu.CompilerParams(
            dimension_semantics=("parallel", "parallel"),
            vmem_limit_bytes=vmem_limit),
    )(x, wnt, labels)

    return out[:B] if B_pad != B else out


# ------------------------- pure-JAX references ------------------------------

def _margin(cos_th, labels, n_classes, s, m):
    sin_th = jnp.sqrt(1.0 - cos_th ** 2)
    cos_m, sin_m = math.cos(m), math.sin(m)
    th = math.cos(math.pi - m)
    mm = math.sin(math.pi - m) * m
    cos_th_m = jnp.where(cos_th > th, cos_th * cos_m - sin_th * sin_m,
                         cos_th - mm)
    onehot = jax.nn.one_hot(labels.reshape(-1), n_classes, dtype=cos_th.dtype)
    return (onehot * cos_th_m + (1.0 - onehot) * cos_th) * s


def _reference_f32(inputs, labels, weight, s=10.0, m=0.5):
    """Exact f32 mirror of the PyTorch forward."""
    wn = weight / jnp.maximum(
        jnp.linalg.norm(weight, axis=1, keepdims=True), 1e-12)
    cos_th = jnp.clip(inputs @ wn.T, -1.0, 1.0)
    return _margin(cos_th, labels, weight.shape[0], s, m)


def _reference_bf16_inputs(inputs, labels, weight, s=10.0, m=0.5):
    """Same math, but with the matmul operands rounded to bf16 exactly like
    the kernel's MXU path (products/accumulation in f32)."""
    wnt = prepare_arc_weight(weight).astype(jnp.float32)
    xb = inputs.astype(jnp.bfloat16).astype(jnp.float32)
    cos_th = jnp.clip(xb @ wnt, -1.0, 1.0)
    return _margin(cos_th, labels, weight.shape[0], s, m)


if __name__ == "__main__":
    key = jax.random.PRNGKey(0)
    k1, k2, k3 = jax.random.split(key, 3)

    B, in_features, out_features = 8, 32, 128
    s_param, m_param = 10.0, 0.5

    # Deterministic xavier_normal_-style init: std = sqrt(2/(fan_in+fan_out))
    std = math.sqrt(2.0 / (in_features + out_features))
    weight = jax.random.normal(k1, (out_features, in_features),
                               dtype=jnp.float32) * std

    # ArcFace callers L2-normalize embeddings so cosines land in [-1, 1].
    x = jax.random.normal(k2, (B, in_features), dtype=jnp.float32)
    x = x / jnp.linalg.norm(x, axis=1, keepdims=True)

    labels = jax.random.randint(k3, (B,), 0, out_features, dtype=jnp.int32)

    wnt = prepare_arc_weight(weight)   # cacheable across training steps

    # Default path: bf16 logits (the recommended, store-bound-friendly config).
    out_bf16 = arc_module_forward(x, labels, wnt=wnt, s=s_param, m=m_param)
    out_bf16 = jax.block_until_ready(out_bf16)
    assert out_bf16.shape == (B, out_features)
    assert out_bf16.dtype == jnp.bfloat16

    # f32-logit path for a tight check against a reference using the same
    # bf16-rounded matmul operands as the kernel's MXU path.
    out_f32 = arc_module_forward(x, labels, wnt=wnt, s=s_param, m=m_param,
                                 out_dtype=jnp.float32)
    out_f32 = jax.block_until_ready(out_f32)

    ref_bf16 = _reference_bf16_inputs(x, labels, weight, s=s_param, m=m_param)
    err = float(jnp.max(jnp.abs(out_f32 - ref_bf16)))
    assert err < 1e-3, err

    # bf16 logits differ from the f32 path only by the final cast
    # (|logit| <= s = 10  ->  rounding <= 0.03125).
    err_b = float(jnp.max(jnp.abs(out_bf16.astype(jnp.float32) - ref_bf16)))
    assert err_b < 0.05, err_b

    # Loose check vs the exact-f32 PyTorch-faithful reference; the slack only
    # covers bf16 rounding of the matmul inputs (<= ~1e-2 per cosine, x s=10).
    ref_f32 = _reference_f32(x, labels, weight, s=s_param, m=m_param)
    err32 = float(jnp.max(jnp.abs(out_f32 - ref_f32)))
    assert err32 < 0.25, err32

    print("KERNEL_OK")
</pallas_src>

<mosaic_0001>
module attributes {stable_mosaic.version = 11 : i64} {
  func.func @_arc_kernel(%arg0: i32, %arg1: i32, %arg2: memref<16x32xbf16, #tpu.memory_space<vmem>>, %arg3: memref<32x128xbf16, #tpu.memory_space<vmem>>, %arg4: memref<16x1xi32, #tpu.memory_space<vmem>>, %arg5: memref<16x128xbf16, #tpu.memory_space<vmem>>) attributes {dimension_semantics = [#tpu.dimension_semantics<parallel>, #tpu.dimension_semantics<parallel>], iteration_bounds = array<i64: 1, 1>, scalar_prefetch = 0 : i64, scratch_operands = 0 : i64, tpu.core_type = #tpu.core_type<tc>, window_params = [{transform_indices = @transform_0, window_bounds = array<i64: 16, 32>}, {transform_indices = @transform_1, window_bounds = array<i64: 32, 128>}, {transform_indices = @transform_2, window_bounds = array<i64: 16, 1>}, {transform_indices = @transform_3, window_bounds = array<i64: 16, 128>}]} {
    %c0 = arith.constant 0 : index
    %c0_0 = arith.constant 0 : index
    %0 = vector.load %arg2[%c0, %c0_0] : memref<16x32xbf16, #tpu.memory_space<vmem>>, vector<16x32xbf16>
    %c0_1 = arith.constant 0 : index
    %c0_2 = arith.constant 0 : index
    %1 = vector.load %arg3[%c0_1, %c0_2] : memref<32x128xbf16, #tpu.memory_space<vmem>>, vector<32x128xbf16>
    %cst = arith.constant dense<0.000000e+00> : vector<16x128xf32>
    %2 = tpu.matmul %0, %1, %cst {dimension_numbers = #tpu.dot_dimension_numbers<[1], [0], [0], [1], [0, 0, 1, 1], [], []>} : vector<16x32xbf16>, vector<32x128xbf16>, vector<16x128xf32> -> vector<16x128xf32>
    %cst_3 = arith.constant -1.000000e+00 : f32
    %cst_4 = arith.constant 1.000000e+00 : f32
    %3 = vector.broadcast %cst_3 : f32 to vector<16x128xf32>
    %4 = arith.maximumf %3, %2 : vector<16x128xf32>
    %5 = vector.broadcast %cst_4 : f32 to vector<16x128xf32>
    %6 = arith.minimumf %5, %4 : vector<16x128xf32>
    %7 = arith.mulf %6, %6 : vector<16x128xf32>
    %cst_5 = arith.constant 1.000000e+00 : f32
    %8 = vector.broadcast %cst_5 : f32 to vector<16x128xf32>
    %9 = arith.subf %8, %7 : vector<16x128xf32>
    %10 = math.sqrt %9 : vector<16x128xf32>
    %cst_6 = arith.constant 0.87758255 : f32
    %11 = vector.broadcast %cst_6 : f32 to vector<16x128xf32>
    %12 = arith.mulf %6, %11 : vector<16x128xf32>
    %cst_7 = arith.constant 0.47942555 : f32
    %13 = vector.broadcast %cst_7 : f32 to vector<16x128xf32>
    %14 = arith.mulf %10, %13 : vector<16x128xf32>
    %15 = arith.subf %12, %14 : vector<16x128xf32>
    %cst_8 = arith.constant -0.87758255 : f32
    %16 = vector.broadcast %cst_8 : f32 to vector<16x128xf32>
    %17 = arith.cmpf ogt, %6, %16 : vector<16x128xf32>
    %cst_9 = arith.constant 0.239712775 : f32
    %18 = vector.broadcast %cst_9 : f32 to vector<16x128xf32>
    %19 = arith.subf %6, %18 : vector<16x128xf32>
    %20 = arith.select %17, %15, %19 : vector<16x128xi1>, vector<16x128xf32>
    %c0_10 = arith.constant 0 : index
    %c0_11 = arith.constant 0 : index
    %21 = vector.load %arg4[%c0_10, %c0_11] : memref<16x1xi32, #tpu.memory_space<vmem>>, vector<16x1xi32>
    %c128_i32 = arith.constant 128 : i32
    %22 = arith.muli %arg0, %c128_i32 : i32
    %23 = vector.broadcast %22 : i32 to vector<16x1xi32>
    %24 = arith.subi %21, %23 : vector<16x1xi32>
    %25 = tpu.iota {dimensions = array<i32: 1>} : vector<16x128xi32>
    %26 = vector.broadcast %24 : vector<16x1xi32> to vector<16x128xi32>
    %27 = arith.cmpi eq, %25, %26 : vector<16x128xi32>
    %28 = arith.select %27, %20, %6 : vector<16x128xi1>, vector<16x128xf32>
    %cst_12 = arith.constant 1.000000e+01 : f32
    %29 = vector.broadcast %cst_12 : f32 to vector<16x128xf32>
    %30 = arith.mulf %28, %29 : vector<16x128xf32>
    %31 = arith.truncf %30 : vector<16x128xf32> to vector<16x128xbf16>
    %c0_13 = arith.constant 0 : index
    %c0_14 = arith.constant 0 : index
    %32 = vector.load %arg5[%c0_13, %c0_14] : memref<16x128xbf16, #tpu.memory_space<vmem>>, vector<16x128xbf16>
    tpu.vector_store %arg5[%c0_13, %c0_14], %31 {strides = array<i32>} : memref<16x128xbf16, #tpu.memory_space<vmem>>, vector<16x128xbf16>,
    return
  }
  func.func @transform_0(%arg0: i32, %arg1: i32) -> (i32, i32) {
    %c0_i32 = arith.constant 0 : i32
    %c0_i32_0 = arith.constant 0 : i32
    return %arg1, %c0_i32 : i32, i32
  }
  func.func @transform_1(%arg0: i32, %arg1: i32) -> (i32, i32) {
    %c0_i32 = arith.constant 0 : i32
    %c0_i32_0 = arith.constant 0 : i32
    return %c0_i32, %arg0 : i32, i32
  }
  func.func @transform_2(%arg0: i32, %arg1: i32) -> (i32, i32) {
    %c0_i32 = arith.constant 0 : i32
    %c0_i32_0 = arith.constant 0 : i32
    return %arg1, %c0_i32 : i32, i32
  }
  func.func @transform_3(%arg0: i32, %arg1: i32) -> (i32, i32) {
    %c0_i32 = arith.constant 0 : i32
    return %arg1, %arg0 : i32, i32
  }
}

</mosaic_0001>

<bundles_post_ra>
// kernel: tpu_custom_call.1
= control target key start
LH: loop header
LB: loop body
LE: loop exit
PB: predicated region body
PF: predicated region fallthrough
CT: control target
= control target key end

     0   :  { %8 = vsyncpa [#allocation3], 0  ;;  %s317_s0 = inlined_call_operand.hbm [shape: bf16[16,32], index: 0, kind: input, shape index: {}]   ;;  %s318_s1 = inlined_call_operand.vmem [shape: bf16[32,128], index: 1, kind: input, shape index: {}]   ;;  %s319_s2 = inlined_call_operand.vmem [shape: s32[16,1], index: 2, kind: input, shape index: {}]   ;;  %s320_s3 = inlined_call_operand.hbm [shape: bf16[16,128], index: 3, kind: output, shape index: {}]  }
   0x1   :  { %9 = vsyncpa [#allocation4], 0  ;;  %s266_s12 = smov [#allocation2]  }
   0x2   :  { %s15_s13 = sshll.u32 %s266_s12, 4  ;;  %s16_s13 = int_to_ptr.vmem [resolvable:$true] %s15_s13 }
   0x3   :  { %s230_s14 = scalar_lea.vmem %s16_s13, 128  ;;  %p235_p1 = scmp.lt.s32.totalorder %s16_s13, %s16_s13 }
   0x4   :  { %p231_p0 = scmp.ne.s32.totalorder %s16_s13, %s230_s14  ;;  %p236_p2 = scmp.lt.s32.totalorder %s230_s14, %s230_s14 }
   0x6   :  { %p237_p3 = por %p236_p2, %p235_p1 }
   0x8   :  { %p238_p4 = pnand %p237_p3, %p231_p0 }
   0xa   :  { %241 = shalt.err (!%p238_p4)
}
   0xb   :  { %s267_s15 = smov 64   ;;  %s268_s16 = smov 4  }
   0xc   :  { %21 = dma.hbm_to_vmem [thread:$0]  %s317_s0, 128, %s16_s13, [#allocation3], %s267_s15, %s267_s15, %s268_s16  }
   0xd   :  { %262 = dma.done.wait [#allocation3], 128  }
   0xe   :  { %263 = vsyncadd [#allocation3], 4294967168  ;;  %v269_v0 = vmov 0.0   ;;  %vm270_vm0 = vmmov 0   ;;  %v271_v1 = vmov 0   ;;  %v215_v2 = vld [vmem:[%s318_s1 + $0x8] sm:$0xff]   ;;  %v138_v18 = vlaneseq }
   0xf   :  { %199 = vmatprep.subr.bf16.mxu0 %v269_v0  ;;  %203 = vmatprep.mubr.msk.bf16.mxu0 %vm270_vm0, %v269_v0  ;;  %v216_v3 = vld [vmem:[%s318_s1] sm:$0xff]   ;;  %v133_v6 = vld [vmem:[%s319_s2 + $0x8] sm:$0xff]  ;;  %vm53_vm1 = vcmask 261120   ;;  %s272_s1 = smov [#allocation5]  }
  0x10   :  { %214 = vset.pattern.permute.xlu0 %v271_v1  ;;  %200 = vmatpush3.bf16.msra.mxu0 %v215_v2  ;;  %v132_v4 = vld [vmem:[%s319_s2] sm:$0xff]  ;;  %v139_v25 = vand.u32 127, %v138_v18  ;;  %s167_s2 = sshll.u32 %s272_s1, 4  ;;  %s168_s2 = int_to_ptr.vmem [resolvable:$true] %s167_s2 }
  0x11   :  { %201 = vmatprep.subr.bf16.mxu0 %v269_v0  ;;  %141 = vperm.xlu0 %214, %v132_v4   ;;  %v217_v5 = vld [vmem:[#allocation2] sm:$0xff]   ;;  %s242_s26 = scalar_lea.vmem %s168_s2, 128  ;;  %p247_p6 = scmp.lt.s32.totalorder %s168_s2, %s168_s2 }
  0x12   :  { %p243_p5 = scmp.ne.s32.totalorder %s168_s2, %s242_s26  ;;  %p248_p7 = scmp.lt.s32.totalorder %s242_s26, %s242_s26 }
  0x14   :  { %202 = vmatpush3.bf16.msra.mxu0 %v216_v3  ;;  %p249_p8 = por %p248_p7, %p247_p6 }
  0x15   :  { %144 = vperm.xlu0 %214, %v133_v6  }
  0x16   :  { %p250_p9 = pnand %p249_p8, %p243_p5 }
  0x17   :  { %204 = vmatmul.mubr.msk.bf16.vlgmr.msra.gmra.mxu0 %vm53_vm1, %v217_v5 }
  0x8c   :  { %v142_v23 = vpop.permute.xlu0 %141 }
  0x8d   :  { %vm146_vm7 = vcmp.eq.s32.totalorder %v139_v25, %v142_v23 }
  0x90   :  { %v145_v37 = vpop.permute.xlu0 %144 }
  0x91   :  { %vm147_vm9 = vcmp.eq.s32.totalorder %v139_v25, %v145_v37 }
  0xd7   :  { %v91_v7 = vpop.f32.mrf.mxu0 }
  0xd8   :  { %v183_v8 = vclamps-f32 %v91_v7, 1.0 }
  0xd9   :  { %v205_v9 = vpop.f32.mrf.mxu0 }
  0xda   :  { %v102_v10 = vmul.f32 %v183_v8, %v183_v8  ;;  %v120_v26 = vmul.f32 0.87758255, %v183_v8  ;;  %v185_v31 = vadd.f32 -0.23971277, %v183_v8  ;;  %vm126_vm6 = vcmp.gt.f32.partialorder %v183_v8, -0.87758255 }
  0xdb   :  { %v94_v11 = vpop.f32.mrf.mxu0 }
  0xdc   :  { %v104_v12 = vsub.f32 1.0, %v102_v10  ;;  %v184_v13 = vclamps-f32 %v94_v11, 1.0 }
  0xdd   :  { %v206_v14 = vpop.f32.mrf.mxu0 }
  0xde   :  { %218 = vrsqrt.f32 %v104_v12  ;;  %v103_v15 = vmul.f32 %v184_v13, %v184_v13  ;;  %vm108_vm2 = vcmp.eq.f32.partialorder %v104_v12, inf  ;;  %v111_v20 = vand.u32 2147483648, %v104_v12 }
  0xdf   :  { %vm110_vm3 = vcmp.eq.f32.partialorder %v104_v12, 0.0  ;;  %v121_v35 = vmul.f32 0.87758255, %v184_v13  ;;  %v186_v39 = vadd.f32 -0.23971277, %v184_v13 }
  0xe0   :  { %v105_v16 = vsub.f32 1.0, %v103_v15  ;;  %vm127_vm8 = vcmp.gt.f32.partialorder %v184_v13, -0.87758255 }
  0xe2   :  { %220 = vrsqrt.f32 %v105_v16  ;;  %vm115_vm4 = vcmp.eq.f32.partialorder %v105_v16, inf  ;;  %v118_v29 = vand.u32 2147483648, %v105_v16  ;;  %vm117_vm5 = vcmp.eq.f32.partialorder %v105_v16, 0.0 }
  0xeb   :  { %v219_v17 = vpop.eup %218 }
  0xec   :  { %v107_v19 = vmul.f32 %v219_v17, %v104_v12 }
  0xee   :  { %v109_v21 = vsel %vm108_vm2, %v104_v12, %v107_v19 }
  0xef   :  { %v221_v22 = vpop.eup %220  ;;  %v112_v24 = vsel %vm110_vm3, %v111_v20, %v109_v21 }
  0xf0   :  { %v122_v27 = vmul.f32 0.47942555, %v112_v24  ;;  %v114_v28 = vmul.f32 %v221_v22, %v105_v16 }
  0xf2   :  { %v124_v30 = vsub.f32 %v120_v26, %v122_v27  ;;  %v116_v32 = vsel %vm115_vm4, %v105_v16, %v114_v28 }
  0xf3   :  { %v119_v33 = vsel %vm117_vm5, %v118_v29, %v116_v32 }
  0xf4   :  { %v130_v34 = vsel %vm126_vm6, %v124_v30, %v185_v31  ;;  %v123_v36 = vmul.f32 0.47942555, %v119_v33 }
  0xf5   :  { %v148_v40 = vsel %vm146_vm7, %v130_v34, %v183_v8 }
  0xf6   :  { %v125_v38 = vsub.f32 %v121_v35, %v123_v36  ;;  %v150_v43 = vmul.f32 10.0, %v148_v40 }
  0xf8   :  { %v131_v41 = vsel %vm127_vm8, %v125_v38, %v186_v39 }
  0xf9   :  { %v149_v42 = vsel %vm147_vm9, %v131_v41, %v184_v13 }
  0xfa   :  { %v151_v44 = vmul.f32 10.0, %v149_v42 }
  0xfc   :  { %v194_v45 = vpack.c.bf16 %v151_v44, %v150_v43 }
  0xfe   :  { %195 = vst [vmem:[#allocation5] sm:$0xff] %v194_v45  }
  0xff   :  { %253 = shalt.err (!%p250_p9)
}
 0x100   :  { %173 = dma.vmem_to_hbm [thread:$0]  %s168_s2, 128, %s320_s3, [#allocation4], %s267_s15, %s267_s15, %s268_s16  }
 0x101   :  { %264 = dma.done.wait [#allocation4], 128  }
 0x102   :  { %265 = vsyncadd [#allocation4], 4294967168 }
 0x103   :  { %177 = vsyncpa [#allocation3], 1 }
 0x104   :  { %178 = vsyncpa [#allocation4], 1 }

</bundles_post_ra>
